<compile_context>
chip_gen: v7x
topology: tpu7x:2x2x1
jax: 0.10.0
libtpu: 0.0.40
codegen_flags: <defaults>
</compile_context>

<pallas_src>
import functools
import math

import jax
import jax.numpy as jnp
from jax.experimental import pallas as pl
from jax.experimental.pallas import tpu as pltpu


_MASK_MIN = -1e30   # finite floor for the running max (avoids -inf - -inf -> NaN)


def _round_up(x, m):
    return ((x + m - 1) // m) * m


# ----------------------------------------------------------------------------
# Pallas kernel: one (batch, q-tile, kv-tile) step, all heads per step.
#   nvk_ref  : (B, nq)  int32 in SMEM (scalar prefetch): # of valid kv tiles
#   q_ref    : (1, H, tq, Dk)   bf16, pre-scaled by 1/sqrt(Dk)
#   kp_ref   : (1, H, Dk, tkv)  bf16, (k + p) pre-transposed
#   v_ref    : (1, H, tkv, Dk)  bf16
#   bias_ref : (1, H, 1, tkv)   f32,  (u.k_j + v.p_j)/sqrt(Dk); -inf on masked/pad cols
#                               when the mask is a padding mask
#   mask_ref : (1, tq, tkv)     bf16 additive {0,-inf}  (only for (B,T1,T2) masks)
#   o_ref    : (1, tq, H*Dk)    bf16 (lane-dense output block)
#   m_sc/l_sc: (H, tq, 1)       f32  running max / denom
#   acc_sc   : (H, tq, Dk)      f32  running numerator
# ----------------------------------------------------------------------------
def _rel_attn_kernel(nvk_ref, q_ref, kp_ref, v_ref, bias_ref, *rest,
                     n_head, has_mask):
    if has_mask:
        mask_ref, o_ref, m_sc, l_sc, acc_sc = rest
    else:
        mask_ref = None
        o_ref, m_sc, l_sc, acc_sc = rest

    b = pl.program_id(0)
    qi = pl.program_id(1)
    ki = pl.program_id(2)

    @pl.when(ki == 0)
    def _():
        m_sc[...] = jnp.full(m_sc.shape, _MASK_MIN, jnp.float32)
        l_sc[...] = jnp.zeros(l_sc.shape, jnp.float32)
        acc_sc[...] = jnp.zeros(acc_sc.shape, jnp.float32)

    n_valid = nvk_ref[b, qi]

    @pl.when(ki < n_valid)
    def _():
        # hoisted additive mask (one load/cast, reused by every head)
        madd = mask_ref[0].astype(jnp.float32) if has_mask else None

        def head_body(h, carry):
            q_h = q_ref[0, h]                                  # (tq, Dk)   bf16
            kp_h = kp_ref[0, h]                                # (Dk, tkv)  bf16
            v_h = v_ref[0, h]                                  # (tkv, Dk)  bf16
            b_h = bias_ref[0, h]                               # (1, tkv)   f32

            # scores: single MXU matmul (no transpose), f32 accumulation,
            # plus the rank-1 bias (and the additive mask if present).
            s = jnp.dot(q_h, kp_h, preferred_element_type=jnp.float32)
            s = s + b_h
            if has_mask:
                s = s + madd                                   # masked -> -inf

            # online softmax (statistics in f32).
            m_prev = m_sc[h]                                   # (tq, 1)
            m_new = jnp.maximum(m_prev, jnp.max(s, axis=-1, keepdims=True))
            alpha = jnp.exp(m_prev - m_new)
            p = jnp.exp(s - m_new)                             # masked cols == 0
            l_sc[h] = alpha * l_sc[h] + jnp.sum(p, axis=-1, keepdims=True)
            acc_sc[h] = alpha * acc_sc[h] + jnp.dot(
                p.astype(v_h.dtype), v_h, preferred_element_type=jnp.float32)
            m_sc[h] = m_new
            return carry

        # non-unrolled loop over heads: bounds the (tq,tkv) live ranges.
        jax.lax.fori_loop(0, n_head, head_body, 0, unroll=False)

    @pl.when(ki == pl.num_programs(2) - 1)
    def _():
        outs = []
        for h in range(n_head):
            # normalize after the PV matmul: reciprocal on the EUP.
            inv_l = pl.reciprocal(jnp.maximum(l_sc[h], 1e-30), approx=True)
            outs.append(acc_sc[h] * inv_l)                     # (tq, Dk)
        o_ref[0] = jnp.concatenate(outs, axis=-1).astype(o_ref.dtype)


def rel_attention_core(q, kp_t, v, bias, mask):
    """q:(B,H,T1,Dk) bf16 (pre-scaled); kp_t:(B,H,Dk,T2) bf16 (k+p, transposed);
    v:(B,H,T2,Dk) bf16; bias:(B,H,T2) f32 (scaled); mask:(B,Tm,T2) int32, Tm in
    {1, T1}, 1 = keep.  Returns (B, T1, H*Dk) bf16."""
    B, H, T1, Dk = q.shape
    T2 = v.shape[2]
    Tm = mask.shape[1]
    has_mask = Tm != 1            # (B,T1,T2) mask -> additive mask operand

    # --- tile sizes ----------------------------------------------------------
    # tq: multiple of 16 (bf16 sublane tiling), capped at 256 for K/V reuse.
    tq = min(_round_up(T1, 16), 256)
    T1p = _round_up(T1, tq)
    # tkv: multiple of 128 (lane axis of kp_t / bias / mask); up to 1024, picking
    # the candidate that minimizes padded kv length.
    if T2 <= 1024:
        tkv = _round_up(T2, 128)
    else:
        tkv = min((1024, 512), key=lambda t: (_round_up(T2, t), -t))
    T2p = _round_up(T2, tkv)
    nq = T1p // tq
    nk = T2p // tkv

    def pad_axis(x, axis, new_size):
        if x.shape[axis] == new_size:
            return x
        pads = [(0, 0)] * x.ndim
        pads[axis] = (0, new_size - x.shape[axis])
        return jnp.pad(x, pads)

    qp = pad_axis(q, 2, T1p)
    kpp = pad_axis(kp_t, 3, T2p)
    vp = pad_axis(v, 2, T2p)
    biasp = pad_axis(bias, 2, T2p)                    # (B, H, T2p)
    maskp = pad_axis(mask, 2, T2p)                    # padded keys -> 0 (masked)
    if has_mask:
        maskp = pad_axis(maskp, 1, T1p)

    # --- per-(batch, q-tile) number of valid kv tiles (skip fully-masked tiles)
    kv_pos = jnp.arange(1, T2p + 1, dtype=jnp.int32)
    valid_len = jnp.max(maskp * kv_pos[None, None, :], axis=-1)   # (B, Tm_p)
    if has_mask:
        per_qtile = jnp.max(valid_len.reshape(B, nq, tq), axis=-1)
    else:
        per_qtile = jnp.broadcast_to(valid_len, (B, nq))
    nvk = ((per_qtile + tkv - 1) // tkv).astype(jnp.int32)        # (B, nq)

    # --- mask handling -------------------------------------------------------
    extra_ops = []
    if has_mask:
        bias4 = biasp[:, :, None, :]                              # (B,H,1,T2p)
        mask_add = jnp.where(maskp != 0, 0.0, -jnp.inf).astype(jnp.bfloat16)
        extra_ops = [mask_add]                                    # (B,T1p,T2p) bf16
    else:
        # fold the (padding) mask into the bias column vector -> no mask operand.
        bias4 = jnp.where(maskp != 0, biasp, -jnp.inf)[:, :, None, :]

    def _kv(ki, n_valid):
        # clamp to last valid tile: skipped steps revisit the same block (no DMA).
        return jnp.maximum(jnp.minimum(ki, n_valid - 1), 0)

    in_specs = [
        pl.BlockSpec((1, H, tq, Dk),
                     lambda b, qi, ki, nvk_s: (b, 0, qi, 0)),
        pl.BlockSpec((1, H, Dk, tkv),
                     lambda b, qi, ki, nvk_s: (b, 0, 0, _kv(ki, nvk_s[b, qi]))),
        pl.BlockSpec((1, H, tkv, Dk),
                     lambda b, qi, ki, nvk_s: (b, 0, _kv(ki, nvk_s[b, qi]), 0)),
        pl.BlockSpec((1, H, 1, tkv),
                     lambda b, qi, ki, nvk_s: (b, 0, 0, _kv(ki, nvk_s[b, qi]))),
    ]
    if has_mask:
        in_specs.append(
            pl.BlockSpec((1, tq, tkv),
                         lambda b, qi, ki, nvk_s: (b, qi, _kv(ki, nvk_s[b, qi]))))

    kernel = functools.partial(_rel_attn_kernel, n_head=H, has_mask=has_mask)
    out = pl.pallas_call(
        kernel,
        out_shape=jax.ShapeDtypeStruct((B, T1p, H * Dk), jnp.bfloat16),
        grid_spec=pltpu.PrefetchScalarGridSpec(
            num_scalar_prefetch=1,
            grid=(B, nq, nk),
            in_specs=in_specs,
            out_specs=pl.BlockSpec((1, tq, H * Dk),
                                   lambda b, qi, ki, nvk_s: (b, qi, 0)),
            scratch_shapes=[
                pltpu.VMEM((H, tq, 1), jnp.float32),
                pltpu.VMEM((H, tq, 1), jnp.float32),
                pltpu.VMEM((H, tq, Dk), jnp.float32),
            ]),
        compiler_params=pltpu.CompilerParams(
            dimension_semantics=("parallel", "parallel", "arbitrary"),
            vmem_limit_bytes=48 * 1024 * 1024),
    )(nvk, qp, kpp, vp, bias4, *extra_ops)
    return out[:, :T1, :]


# ----------------------------------------------------------------------------
# Parameter init (deterministic, synthetic — shapes from the module __init__)
# ----------------------------------------------------------------------------
def init_params(key, n_head, n_feat):
    d_k = n_feat // n_head
    ks = jax.random.split(key, 12)

    def xavier(k, fan_in, fan_out, shape):
        bound = math.sqrt(6.0 / (fan_in + fan_out))
        return jax.random.uniform(k, shape, jnp.float32, -bound, bound)

    # weights stored as (in, out) so y = x @ W + b
    return dict(
        wq=xavier(ks[0], n_feat, n_feat, (n_feat, n_feat)),
        bq=0.01 * jax.random.normal(ks[1], (n_feat,), jnp.float32),
        wk=xavier(ks[2], n_feat, n_feat, (n_feat, n_feat)),
        bk=0.01 * jax.random.normal(ks[3], (n_feat,), jnp.float32),
        wv=xavier(ks[4], n_feat, n_feat, (n_feat, n_feat)),
        bv=0.01 * jax.random.normal(ks[5], (n_feat,), jnp.float32),
        wout=xavier(ks[6], n_feat, n_feat, (n_feat, n_feat)),
        bout=0.01 * jax.random.normal(ks[7], (n_feat,), jnp.float32),
        wpos=xavier(ks[8], n_feat, n_feat, (n_feat, n_feat)),   # linear_pos, no bias
        pos_bias_u=xavier(ks[9], n_head, d_k, (n_head, d_k)),
        pos_bias_v=xavier(ks[10], n_head, d_k, (n_head, d_k)),
    )


# ----------------------------------------------------------------------------
# Forward pass (matches RelPositionMultiHeadedAttention.forward, use_sdpa=False)
# ----------------------------------------------------------------------------
def rel_pos_mha_forward(params, query, key, value, mask, pos_emb, cache,
                        n_head, d_k, *, use_kernel=True):
    B, T1, _ = query.shape
    T2_in = key.shape[1]

    def lin(x, w, b=None):
        y = jnp.dot(x, w)
        return y + b if b is not None else y

    # forward_qkv
    q = lin(query, params["wq"], params["bq"]).reshape(B, T1, n_head, d_k)   # (B,T1,h,dk)
    k = lin(key, params["wk"], params["bk"]).reshape(B, T2_in, n_head, d_k)
    v = lin(value, params["wv"], params["bv"]).reshape(B, T2_in, n_head, d_k)
    k = jnp.transpose(k, (0, 2, 1, 3))                                       # (B,h,T2,dk)
    v = jnp.transpose(v, (0, 2, 1, 3))

    # cache (1, head, cache_t, d_k*2)
    if cache.shape[0] > 0:
        key_cache, value_cache = jnp.split(cache, 2, axis=-1)
        k = jnp.concatenate(
            [jnp.broadcast_to(key_cache, (B,) + key_cache.shape[1:]), k], axis=2)
        v = jnp.concatenate(
            [jnp.broadcast_to(value_cache, (B,) + value_cache.shape[1:]), v], axis=2)
    new_cache = jnp.concatenate([k, v], axis=-1)
    T2 = k.shape[2]

    # positional projection: (Bp, h, T2, dk), Bp in {1, B}
    Bp = pos_emb.shape[0]
    p = lin(pos_emb, params["wpos"]).reshape(Bp, -1, n_head, d_k)
    p = jnp.transpose(p, (0, 2, 1, 3)).astype(jnp.float32)
    assert p.shape[2] == T2, "pos_emb length must match key length after cache concat"
    p_b = jnp.broadcast_to(p, (B,) + p.shape[1:])

    # mask -> int32, keep its (B,1,T2)/(B,T1,T2) shape (never broadcast to T1 in HBM)
    if mask.shape[-1] > 0:
        m = mask[..., :T2].astype(jnp.int32)
    else:
        m = jnp.ones((B, 1, T2), jnp.int32)

    scale = 1.0 / math.sqrt(d_k)
    q_bhtd = jnp.transpose(q, (0, 2, 1, 3))                                  # (B,h,T1,dk)

    if use_kernel:
        # scores == (q+u) k^T + (q+v) p^T == q (k+p)^T + (u.k_j + v.p_j)
        # (k+p) is pre-transposed so the kernel does a plain (tq,Dk)@(Dk,tkv) matmul.
        kp_t = jnp.transpose((k + p_b).astype(jnp.bfloat16), (0, 1, 3, 2))   # (B,h,dk,T2)
        bias = (jnp.einsum("hd,bhtd->bht", params["pos_bias_u"], k)
                + jnp.einsum("hd,bhtd->bht", params["pos_bias_v"], p_b)) * scale
        x = rel_attention_core((q_bhtd * scale).astype(jnp.bfloat16),
                               kp_t, v.astype(jnp.bfloat16),
                               bias.astype(jnp.float32), m)                  # (B,T1,h*dk) bf16
        x = x.astype(jnp.float32)
    else:
        # pure-JAX f32 reference of the original module math
        q_u = q_bhtd + params["pos_bias_u"][None, :, None, :]
        q_v = q_bhtd + params["pos_bias_v"][None, :, None, :]
        ac = jnp.einsum("bhqd,bhkd->bhqk", q_u, k)
        bd = jnp.einsum("bhqd,bhkd->bhqk", q_v, p_b)
        scores = (ac + bd) * scale
        masked = (m[:, None, :, :] == 0)
        scores = jnp.where(masked, -jnp.inf, scores)
        attn = jax.nn.softmax(scores, axis=-1)
        attn = jnp.where(masked, 0.0, attn)
        x = jnp.einsum("bhqk,bhkd->bhqd", attn, v)
        x = jnp.transpose(x, (0, 2, 1, 3)).reshape(B, T1, n_head * d_k)

    out = lin(x, params["wout"], params["bout"])
    return out, new_cache


# TODO(synk): attention dropout is treated as identity (eval mode); the use_sdpa=True
# branch (torch SDPA delegation) is not implemented — only the explicit-softmax path.
# TODO(synk): for B=1 streaming decode on v7x, a head-parallel grid axis would be
# needed to occupy both TensorCores; not implemented here.

if __name__ == "__main__":
    n_head, n_feat = 4, 32
    d_k = n_feat // n_head
    B, T1, T2 = 2, 8, 8

    root = jax.random.PRNGKey(0)
    kparam, kq, kk, kv, kpos = jax.random.split(root, 5)

    params = init_params(kparam, n_head, n_feat)
    query = jax.random.normal(kq, (B, T1, n_feat), jnp.float32)
    key = jax.random.normal(kk, (B, T2, n_feat), jnp.float32)
    value = jax.random.normal(kv, (B, T2, n_feat), jnp.float32)
    pos_emb = jax.random.normal(kpos, (1, T2, n_feat), jnp.float32)
    cache = jnp.zeros((0, 0, 0, 0), jnp.float32)

    # case 1: padding-style mask (B, 1, T2): first batch keeps 6 frames, second all 8
    lens = jnp.array([6, 8], jnp.int32)
    pad_mask = (jnp.arange(T2)[None, None, :] < lens[:, None, None])

    out, new_cache = rel_pos_mha_forward(params, query, key, value, pad_mask,
                                         pos_emb, cache, n_head, d_k,
                                         use_kernel=True)
    jax.block_until_ready(out)
    jax.block_until_ready(new_cache)

    ref_out, ref_cache = rel_pos_mha_forward(params, query, key, value, pad_mask,
                                             pos_emb, cache, n_head, d_k,
                                             use_kernel=False)
    assert out.shape == (B, T1, n_feat)
    assert new_cache.shape == (B, n_head, T2, 2 * d_k)
    # bf16 MXU inputs / bf16 kernel output -> compare with bf16-level tolerance
    assert jnp.allclose(out, ref_out, atol=5e-2, rtol=5e-2)
    assert jnp.allclose(new_cache, ref_cache, atol=1e-6, rtol=1e-6)

    # case 2: square (B, T1, T2) causal mask exercises the additive-mask path
    causal = jnp.broadcast_to(
        jnp.tril(jnp.ones((T1, T2), jnp.int32))[None], (B, T1, T2)).astype(jnp.bool_)
    out2, _ = rel_pos_mha_forward(params, query, key, value, causal,
                                  pos_emb, cache, n_head, d_k, use_kernel=True)
    ref2, _ = rel_pos_mha_forward(params, query, key, value, causal,
                                  pos_emb, cache, n_head, d_k, use_kernel=False)
    jax.block_until_ready(out2)
    assert jnp.allclose(out2, ref2, atol=5e-2, rtol=5e-2)

    print("KERNEL_OK")
</pallas_src>

<mosaic_0001>
module attributes {stable_mosaic.version = 11 : i64} {
  func.func @_rel_attn_kernel(%arg0: i32, %arg1: i32, %arg2: i32, %arg3: memref<2x1xi32, #tpu.memory_space<smem>>, %arg4: memref<1x4x16x8xbf16, #tpu.memory_space<vmem>>, %arg5: memref<1x4x8x128xbf16, #tpu.memory_space<vmem>>, %arg6: memref<1x4x128x8xbf16, #tpu.memory_space<vmem>>, %arg7: memref<1x4x1x128xf32, #tpu.memory_space<vmem>>, %arg8: memref<1x16x32xbf16, #tpu.memory_space<vmem>>, %arg9: memref<4x16x1xf32, #tpu.memory_space<vmem>>, %arg10: memref<4x16x1xf32, #tpu.memory_space<vmem>>, %arg11: memref<4x16x8xf32, #tpu.memory_space<vmem>>) attributes {dimension_semantics = [#tpu.dimension_semantics<parallel>, #tpu.dimension_semantics<parallel>, #tpu.dimension_semantics<arbitrary>], iteration_bounds = array<i64: 2, 1, 1>, scalar_prefetch = 1 : i64, scratch_operands = 3 : i64, tpu.core_type = #tpu.core_type<tc>, window_params = [{transform_indices = @transform_0, window_bounds = array<i64: 1, 4, 16, 8>}, {transform_indices = @transform_1, window_bounds = array<i64: 1, 4, 8, 128>}, {transform_indices = @transform_2, window_bounds = array<i64: 1, 4, 128, 8>}, {transform_indices = @transform_3, window_bounds = array<i64: 1, 4, 1, 128>}, {transform_indices = @transform_4, window_bounds = array<i64: 1, 16, 32>}]} {
    %c0_i32 = arith.constant 0 : i32
    %0 = arith.cmpi eq, %arg2, %c0_i32 : i32
    %1 = arith.extui %0 : i1 to i32
    %c0_i32_0 = arith.constant 0 : i32
    %2 = arith.cmpi ne, %1, %c0_i32_0 : i32
    scf.if %2 {
      %cst = arith.constant -1.000000e+30 : f32
      %12 = vector.broadcast %cst : f32 to vector<4x16x1xf32>
      %c0 = arith.constant 0 : index
      %c0_4 = arith.constant 0 : index
      %c0_5 = arith.constant 0 : index
      %13 = vector.load %arg9[%c0, %c0_4, %c0_5] : memref<4x16x1xf32, #tpu.memory_space<vmem>>, vector<4x16x1xf32>
      tpu.vector_store %arg9[%c0, %c0_4, %c0_5], %12 {strides = array<i32>} : memref<4x16x1xf32, #tpu.memory_space<vmem>>, vector<4x16x1xf32>,
      %cst_6 = arith.constant 0.000000e+00 : f32
      %14 = vector.broadcast %cst_6 : f32 to vector<4x16x1xf32>
      %c0_7 = arith.constant 0 : index
      %c0_8 = arith.constant 0 : index
      %c0_9 = arith.constant 0 : index
      %15 = vector.load %arg10[%c0_7, %c0_8, %c0_9] : memref<4x16x1xf32, #tpu.memory_space<vmem>>, vector<4x16x1xf32>
      tpu.vector_store %arg10[%c0_7, %c0_8, %c0_9], %14 {strides = array<i32>} : memref<4x16x1xf32, #tpu.memory_space<vmem>>, vector<4x16x1xf32>,
      %cst_10 = arith.constant 0.000000e+00 : f32
      %16 = vector.broadcast %cst_10 : f32 to vector<4x16x8xf32>
      %c0_11 = arith.constant 0 : index
      %c0_12 = arith.constant 0 : index
      %c0_13 = arith.constant 0 : index
      %17 = vector.load %arg11[%c0_11, %c0_12, %c0_13] : memref<4x16x8xf32, #tpu.memory_space<vmem>>, vector<4x16x8xf32>
      tpu.vector_store %arg11[%c0_11, %c0_12, %c0_13], %16 {strides = array<i32>} : memref<4x16x8xf32, #tpu.memory_space<vmem>>, vector<4x16x8xf32>,
    } else {
    }
    %3 = arith.index_cast %arg0 : i32 to index
    %4 = arith.index_cast %arg1 : i32 to index
    %5 = memref.load %arg3[%3, %4] : memref<2x1xi32, #tpu.memory_space<smem>>
    %6 = arith.cmpi slt, %arg2, %5 : i32
    %7 = arith.extui %6 : i1 to i32
    %c0_i32_1 = arith.constant 0 : i32
    %8 = arith.cmpi ne, %7, %c0_i32_1 : i32
    scf.if %8 {
      %c0_i32_4 = arith.constant 0 : i32
      %c4_i32 = arith.constant 4 : i32
      %12 = arith.addi %c0_i32_4, %c4_i32 : i32
      %c1_i32 = arith.constant 1 : i32
      scf.for %arg12 = %c0_i32_4 to %12 step %c1_i32  : i32 {
        %c0 = arith.constant 0 : index
        %13 = arith.index_cast %arg12 : i32 to index
        %c0_6 = arith.constant 0 : index
        %c0_7 = arith.constant 0 : index
        %14 = vector.load %arg4[%c0, %13, %c0_6, %c0_7] : memref<1x4x16x8xbf16, #tpu.memory_space<vmem>>, vector<1x1x16x8xbf16>
        %15 = vector.shape_cast %14 : vector<1x1x16x8xbf16> to vector<16x8xbf16>
        %c0_8 = arith.constant 0 : index
        %16 = arith.index_cast %arg12 : i32 to index
        %c0_9 = arith.constant 0 : index
        %c0_10 = arith.constant 0 : index
        %17 = vector.load %arg5[%c0_8, %16, %c0_9, %c0_10] : memref<1x4x8x128xbf16, #tpu.memory_space<vmem>>, vector<1x1x8x128xbf16>
        %18 = vector.shape_cast %17 : vector<1x1x8x128xbf16> to vector<8x128xbf16>
        %c0_11 = arith.constant 0 : index
        %19 = arith.index_cast %arg12 : i32 to index
        %c0_12 = arith.constant 0 : index
        %c0_13 = arith.constant 0 : index
        %20 = vector.load %arg6[%c0_11, %19, %c0_12, %c0_13] : memref<1x4x128x8xbf16, #tpu.memory_space<vmem>>, vector<1x1x128x8xbf16>
        %21 = vector.shape_cast %20 : vector<1x1x128x8xbf16> to vector<128x8xbf16>
        %c0_14 = arith.constant 0 : index
        %22 = arith.index_cast %arg12 : i32 to index
        %c0_15 = arith.constant 0 : index
        %c0_16 = arith.constant 0 : index
        %23 = vector.load %arg7[%c0_14, %22, %c0_15, %c0_16] : memref<1x4x1x128xf32, #tpu.memory_space<vmem>>, vector<1x1x1x128xf32>
        %24 = vector.shape_cast %23 : vector<1x1x1x128xf32> to vector<1x128xf32>
        %cst = arith.constant dense<0.000000e+00> : vector<16x128xf32>
        %25 = tpu.matmul %15, %18, %cst {dimension_numbers = #tpu.dot_dimension_numbers<[1], [0], [0], [1], [0, 0, 1, 1], [], []>} : vector<16x8xbf16>, vector<8x128xbf16>, vector<16x128xf32> -> vector<16x128xf32>
        %26 = vector.broadcast %24 : vector<1x128xf32> to vector<16x128xf32>
        %27 = arith.addf %25, %26 : vector<16x128xf32>
        %28 = arith.index_cast %arg12 : i32 to index
        %c0_17 = arith.constant 0 : index
        %c0_18 = arith.constant 0 : index
        %29 = vector.load %arg9[%28, %c0_17, %c0_18] : memref<4x16x1xf32, #tpu.memory_space<vmem>>, vector<1x16x1xf32>
        %30 = vector.shape_cast %29 : vector<1x16x1xf32> to vector<16x1xf32>
        %cst_19 = arith.constant dense<0xFF800000> : vector<16xf32>
        %31 = vector.multi_reduction <maximumf>, %27, %cst_19 [1] : vector<16x128xf32> to vector<16xf32>
        %32 = vector.shape_cast %31 : vector<16xf32> to vector<16x1xf32>
        %33 = arith.maximumf %30, %32 : vector<16x1xf32>
        %34 = arith.subf %30, %33 : vector<16x1xf32>
        %35 = math.exp %34 : vector<16x1xf32>
        %36 = vector.broadcast %33 : vector<16x1xf32> to vector<16x128xf32>
        %37 = arith.subf %27, %36 : vector<16x128xf32>
        %38 = math.exp %37 : vector<16x128xf32>
        %39 = arith.index_cast %arg12 : i32 to index
        %c0_20 = arith.constant 0 : index
        %c0_21 = arith.constant 0 : index
        %40 = vector.load %arg10[%39, %c0_20, %c0_21] : memref<4x16x1xf32, #tpu.memory_space<vmem>>, vector<1x16x1xf32>
        %41 = vector.shape_cast %40 : vector<1x16x1xf32> to vector<16x1xf32>
        %42 = arith.mulf %35, %41 : vector<16x1xf32>
        %cst_22 = arith.constant dense<0.000000e+00> : vector<16xf32>
        %43 = vector.multi_reduction <add>, %38, %cst_22 [1] : vector<16x128xf32> to vector<16xf32>
        %44 = vector.shape_cast %43 : vector<16xf32> to vector<16x1xf32>
        %45 = arith.addf %42, %44 : vector<16x1xf32>
        %46 = arith.index_cast %arg12 : i32 to index
        %c0_23 = arith.constant 0 : index
        %c0_24 = arith.constant 0 : index
        %47 = vector.load %arg10[%46, %c0_23, %c0_24] : memref<4x16x1xf32, #tpu.memory_space<vmem>>, vector<1x16x1xf32>
        %48 = vector.shape_cast %47 : vector<1x16x1xf32> to vector<16x1xf32>
        %49 = vector.shape_cast %45 : vector<16x1xf32> to vector<1x16x1xf32>
        tpu.vector_store %arg10[%46, %c0_23, %c0_24], %49 {strides = array<i32>} : memref<4x16x1xf32, #tpu.memory_space<vmem>>, vector<1x16x1xf32>,
        %50 = arith.index_cast %arg12 : i32 to index
        %c0_25 = arith.constant 0 : index
        %c0_26 = arith.constant 0 : index
        %51 = vector.load %arg11[%50, %c0_25, %c0_26] : memref<4x16x8xf32, #tpu.memory_space<vmem>>, vector<1x16x8xf32>
        %52 = vector.shape_cast %51 : vector<1x16x8xf32> to vector<16x8xf32>
        %53 = vector.broadcast %35 : vector<16x1xf32> to vector<16x8xf32>
        %54 = arith.mulf %53, %52 : vector<16x8xf32>
        %55 = arith.truncf %38 : vector<16x128xf32> to vector<16x128xbf16>
        %cst_27 = arith.constant dense<0.000000e+00> : vector<16x8xf32>
        %56 = tpu.matmul %55, %21, %cst_27 {dimension_numbers = #tpu.dot_dimension_numbers<[1], [0], [0], [1], [0, 0, 1, 1], [], []>} : vector<16x128xbf16>, vector<128x8xbf16>, vector<16x8xf32> -> vector<16x8xf32>
        %57 = arith.addf %54, %56 : vector<16x8xf32>
        %58 = arith.index_cast %arg12 : i32 to index
        %c0_28 = arith.constant 0 : index
        %c0_29 = arith.constant 0 : index
        %59 = vector.load %arg11[%58, %c0_28, %c0_29] : memref<4x16x8xf32, #tpu.memory_space<vmem>>, vector<1x16x8xf32>
        %60 = vector.shape_cast %59 : vector<1x16x8xf32> to vector<16x8xf32>
        %61 = vector.shape_cast %57 : vector<16x8xf32> to vector<1x16x8xf32>
        tpu.vector_store %arg11[%58, %c0_28, %c0_29], %61 {strides = array<i32>} : memref<4x16x8xf32, #tpu.memory_space<vmem>>, vector<1x16x8xf32>,
        %62 = arith.index_cast %arg12 : i32 to index
        %c0_30 = arith.constant 0 : index
        %c0_31 = arith.constant 0 : index
        %63 = vector.load %arg9[%62, %c0_30, %c0_31] : memref<4x16x1xf32, #tpu.memory_space<vmem>>, vector<1x16x1xf32>
        %64 = vector.shape_cast %63 : vector<1x16x1xf32> to vector<16x1xf32>
        %65 = vector.shape_cast %33 : vector<16x1xf32> to vector<1x16x1xf32>
        tpu.vector_store %arg9[%62, %c0_30, %c0_31], %65 {strides = array<i32>} : memref<4x16x1xf32, #tpu.memory_space<vmem>>, vector<1x16x1xf32>,
      }
      %c4_i32_5 = arith.constant 4 : i32
    } else {
    }
    %c0_i32_2 = arith.constant 0 : i32
    %9 = arith.cmpi eq, %arg2, %c0_i32_2 : i32
    %10 = arith.extui %9 : i1 to i32
    %c0_i32_3 = arith.constant 0 : i32
    %11 = arith.cmpi ne, %10, %c0_i32_3 : i32
    scf.if %11 {
      %c0 = arith.constant 0 : index
      %c0_4 = arith.constant 0 : index
      %c0_5 = arith.constant 0 : index
      %12 = vector.load %arg10[%c0, %c0_4, %c0_5] : memref<4x16x1xf32, #tpu.memory_space<vmem>>, vector<1x16x1xf32>
      %13 = vector.shape_cast %12 : vector<1x16x1xf32> to vector<16x1xf32>
      %cst = arith.constant 1.000000e-30 : f32
      %14 = vector.broadcast %cst : f32 to vector<16x1xf32>
      %15 = arith.maximumf %13, %14 : vector<16x1xf32>
      %16 = tpu.reciprocal %15 {approx = true} : vector<16x1xf32> -> vector<16x1xf32>
      %c0_6 = arith.constant 0 : index
      %c0_7 = arith.constant 0 : index
      %c0_8 = arith.constant 0 : index
      %17 = vector.load %arg11[%c0_6, %c0_7, %c0_8] : memref<4x16x8xf32, #tpu.memory_space<vmem>>, vector<1x16x8xf32>
      %18 = vector.shape_cast %17 : vector<1x16x8xf32> to vector<16x8xf32>
      %19 = vector.broadcast %16 : vector<16x1xf32> to vector<16x8xf32>
      %20 = arith.mulf %18, %19 : vector<16x8xf32>
      %c1 = arith.constant 1 : index
      %c0_9 = arith.constant 0 : index
      %c0_10 = arith.constant 0 : index
      %21 = vector.load %arg10[%c1, %c0_9, %c0_10] : memref<4x16x1xf32, #tpu.memory_space<vmem>>, vector<1x16x1xf32>
      %22 = vector.shape_cast %21 : vector<1x16x1xf32> to vector<16x1xf32>
      %cst_11 = arith.constant 1.000000e-30 : f32
      %23 = vector.broadcast %cst_11 : f32 to vector<16x1xf32>
      %24 = arith.maximumf %22, %23 : vector<16x1xf32>
      %25 = tpu.reciprocal %24 {approx = true} : vector<16x1xf32> -> vector<16x1xf32>
      %c1_12 = arith.constant 1 : index
      %c0_13 = arith.constant 0 : index
      %c0_14 = arith.constant 0 : index
      %26 = vector.load %arg11[%c1_12, %c0_13, %c0_14] : memref<4x16x8xf32, #tpu.memory_space<vmem>>, vector<1x16x8xf32>
      %27 = vector.shape_cast %26 : vector<1x16x8xf32> to vector<16x8xf32>
      %28 = vector.broadcast %25 : vector<16x1xf32> to vector<16x8xf32>
      %29 = arith.mulf %27, %28 : vector<16x8xf32>
      %c2 = arith.constant 2 : index
      %c0_15 = arith.constant 0 : index
      %c0_16 = arith.constant 0 : index
      %30 = vector.load %arg10[%c2, %c0_15, %c0_16] : memref<4x16x1xf32, #tpu.memory_space<vmem>>, vector<1x16x1xf32>
      %31 = vector.shape_cast %30 : vector<1x16x1xf32> to vector<16x1xf32>
      %cst_17 = arith.constant 1.000000e-30 : f32
      %32 = vector.broadcast %cst_17 : f32 to vector<16x1xf32>
      %33 = arith.maximumf %31, %32 : vector<16x1xf32>
      %34 = tpu.reciprocal %33 {approx = true} : vector<16x1xf32> -> vector<16x1xf32>
      %c2_18 = arith.constant 2 : index
      %c0_19 = arith.constant 0 : index
      %c0_20 = arith.constant 0 : index
      %35 = vector.load %arg11[%c2_18, %c0_19, %c0_20] : memref<4x16x8xf32, #tpu.memory_space<vmem>>, vector<1x16x8xf32>
      %36 = vector.shape_cast %35 : vector<1x16x8xf32> to vector<16x8xf32>
      %37 = vector.broadcast %34 : vector<16x1xf32> to vector<16x8xf32>
      %38 = arith.mulf %36, %37 : vector<16x8xf32>
      %c3 = arith.constant 3 : index
      %c0_21 = arith.constant 0 : index
      %c0_22 = arith.constant 0 : index
      %39 = vector.load %arg10[%c3, %c0_21, %c0_22] : memref<4x16x1xf32, #tpu.memory_space<vmem>>, vector<1x16x1xf32>
      %40 = vector.shape_cast %39 : vector<1x16x1xf32> to vector<16x1xf32>
      %cst_23 = arith.constant 1.000000e-30 : f32
      %41 = vector.broadcast %cst_23 : f32 to vector<16x1xf32>
      %42 = arith.maximumf %40, %41 : vector<16x1xf32>
      %43 = tpu.reciprocal %42 {approx = true} : vector<16x1xf32> -> vector<16x1xf32>
      %c3_24 = arith.constant 3 : index
      %c0_25 = arith.constant 0 : index
      %c0_26 = arith.constant 0 : index
      %44 = vector.load %arg11[%c3_24, %c0_25, %c0_26] : memref<4x16x8xf32, #tpu.memory_space<vmem>>, vector<1x16x8xf32>
      %45 = vector.shape_cast %44 : vector<1x16x8xf32> to vector<16x8xf32>
      %46 = vector.broadcast %43 : vector<16x1xf32> to vector<16x8xf32>
      %47 = arith.mulf %45, %46 : vector<16x8xf32>
      %48 = tpu.concatenate %20, %29, %38, %47 in 1 : vector<16x8xf32>, vector<16x8xf32>, vector<16x8xf32>, vector<16x8xf32> -> vector<16x32xf32>
      %49 = arith.truncf %48 : vector<16x32xf32> to vector<16x32xbf16>
      %c0_27 = arith.constant 0 : index
      %c0_28 = arith.constant 0 : index
      %c0_29 = arith.constant 0 : index
      %50 = vector.load %arg8[%c0_27, %c0_28, %c0_29] : memref<1x16x32xbf16, #tpu.memory_space<vmem>>, vector<1x16x32xbf16>
      %51 = vector.shape_cast %50 : vector<1x16x32xbf16> to vector<16x32xbf16>
      %52 = vector.shape_cast %49 : vector<16x32xbf16> to vector<1x16x32xbf16>
      tpu.vector_store %arg8[%c0_27, %c0_28, %c0_29], %52 {strides = array<i32>} : memref<1x16x32xbf16, #tpu.memory_space<vmem>>, vector<1x16x32xbf16>,
    } else {
    }
    return
  }
  func.func @transform_0(%arg0: i32, %arg1: i32, %arg2: i32, %arg3: memref<2x1xi32, #tpu.memory_space<smem>>) -> (i32, i32, i32, i32) {
    %c0_i32 = arith.constant 0 : i32
    %c0_i32_0 = arith.constant 0 : i32
    %c0_i32_1 = arith.constant 0 : i32
    return %arg0, %c0_i32, %arg1, %c0_i32_0 : i32, i32, i32, i32
  }
  func.func @transform_1(%arg0: i32, %arg1: i32, %arg2: i32, %arg3: memref<2x1xi32, #tpu.memory_space<smem>>) -> (i32, i32, i32, i32) {
    %0 = arith.index_cast %arg0 : i32 to index
    %1 = arith.index_cast %arg1 : i32 to index
    %2 = memref.load %arg3[%0, %1] : memref<2x1xi32, #tpu.memory_space<smem>>
    %c1_i32 = arith.constant 1 : i32
    %3 = arith.subi %2, %c1_i32 : i32
    %4 = arith.minsi %arg2, %3 : i32
    %c0_i32 = arith.constant 0 : i32
    %5 = arith.maxsi %4, %c0_i32 : i32
    %c0_i32_0 = arith.constant 0 : i32
    %c0_i32_1 = arith.constant 0 : i32
    %c0_i32_2 = arith.constant 0 : i32
    return %arg0, %c0_i32_0, %c0_i32_1, %5 : i32, i32, i32, i32
  }
  func.func @transform_2(%arg0: i32, %arg1: i32, %arg2: i32, %arg3: memref<2x1xi32, #tpu.memory_space<smem>>) -> (i32, i32, i32, i32) {
    %0 = arith.index_cast %arg0 : i32 to index
    %1 = arith.index_cast %arg1 : i32 to index
    %2 = memref.load %arg3[%0, %1] : memref<2x1xi32, #tpu.memory_space<smem>>
    %c1_i32 = arith.constant 1 : i32
    %3 = arith.subi %2, %c1_i32 : i32
    %4 = arith.minsi %arg2, %3 : i32
    %c0_i32 = arith.constant 0 : i32
    %5 = arith.maxsi %4, %c0_i32 : i32
    %c0_i32_0 = arith.constant 0 : i32
    %c0_i32_1 = arith.constant 0 : i32
    %c0_i32_2 = arith.constant 0 : i32
    return %arg0, %c0_i32_0, %5, %c0_i32_1 : i32, i32, i32, i32
  }
  func.func @transform_3(%arg0: i32, %arg1: i32, %arg2: i32, %arg3: memref<2x1xi32, #tpu.memory_space<smem>>) -> (i32, i32, i32, i32) {
    %0 = arith.index_cast %arg0 : i32 to index
    %1 = arith.index_cast %arg1 : i32 to index
    %2 = memref.load %arg3[%0, %1] : memref<2x1xi32, #tpu.memory_space<smem>>
    %c1_i32 = arith.constant 1 : i32
    %3 = arith.subi %2, %c1_i32 : i32
    %4 = arith.minsi %arg2, %3 : i32
    %c0_i32 = arith.constant 0 : i32
    %5 = arith.maxsi %4, %c0_i32 : i32
    %c0_i32_0 = arith.constant 0 : i32
    %c0_i32_1 = arith.constant 0 : i32
    %c0_i32_2 = arith.constant 0 : i32
    return %arg0, %c0_i32_0, %c0_i32_1, %5 : i32, i32, i32, i32
  }
  func.func @transform_4(%arg0: i32, %arg1: i32, %arg2: i32, %arg3: memref<2x1xi32, #tpu.memory_space<smem>>) -> (i32, i32, i32) {
    %c0_i32 = arith.constant 0 : i32
    %c0_i32_0 = arith.constant 0 : i32
    return %arg0, %arg1, %c0_i32 : i32, i32, i32
  }
}

</mosaic_0001>

<bundles_post_ra>
// kernel: tpu_custom_call.1
= control target key start
LH: loop header
LB: loop body
LE: loop exit
PB: predicated region body
PF: predicated region fallthrough
CT: control target
= control target key end

     0   :  { %s1861_s0 = inlined_call_operand.vmem [shape: s32[2,1], index: 0, kind: input, shape index: {}]   ;;  %s1862_s1 = inlined_call_operand.vmem [shape: bf16[2,4,16,8], index: 1, kind: input, shape index: {}]   ;;  %s1863_s2 = inlined_call_operand.vmem [shape: bf16[2,4,8,128], index: 2, kind: input, shape index: {}]   ;;  %s1864_s3 = inlined_call_operand.vmem [shape: bf16[2,4,128,8], index: 3, kind: input, shape index: {}]   ;;  %s1865_s4 = inlined_call_operand.vmem [shape: f32[2,4,1,128], index: 4, kind: input, shape index: {}]   ;;  %s1866_s5 = inlined_call_operand.hbm [shape: bf16[2,16,32], index: 5, kind: output, shape index: {}]  }
   0x1   :  { %s10_s20 = sshll.u32 %s1861_s0, 4  ;;  %s11_s20 = int_to_ptr.vmem [resolvable:$true] %s10_s20 }
   0x2   :  { %s1487_s21 = scalar_lea.vmem %s11_s20, 32  ;;  %p1492_p1 = scmp.lt.s32.totalorder %s11_s20, %s11_s20 }
   0x3   :  { %p1488_p0 = scmp.ne.s32.totalorder %s11_s20, %s1487_s21  ;;  %p1493_p2 = scmp.lt.s32.totalorder %s1487_s21, %s1487_s21 }
   0x5   :  { %p1494_p3 = por %p1493_p2, %p1492_p1 }
   0x7   :  { %p1495_p4 = pnand %p1494_p3, %p1488_p0 }
   0x9   :  { %1498 = shalt.err (!%p1495_p4)  }
   0xa   :  { %s1589_s22 = smov [#allocation6]  }
   0xb   :  { %13 = dma.vmem_to_smem %s11_s20, 32, %s1589_s22, [#allocation5] }
   0xc   :  { %1555 = dma.done.wait [#allocation5], 32 }
   0xd   :  { %1556 = vsyncadd [#allocation5], 4294967264 }
   0xe   :  { %15 = sfence }
   0xf   :  { %16 = vsyncpa [#allocation8], 0 }
  0x10   :  { %18 = vsyncpa [#allocation8 + $0x1], 0  ;;  %s1635_s23 = smov 0   ;;  %s1637_s24 = smov 0  }
  0x11   :  { %s1639_s0 = smov 0   ;;  %s1641_s25 = smov 0  }
  0x12   :  { %s1643_s26 = smov 0   ;;  %s1645_s27 = smov 0  }
  0x13 LB: > { %1871 = sst [smem:[#allocation11_spill]] %s1579_s26  ;;  %s1203_s28 = sadd.s32 4294967295, %s1583_s27   ;;  %s1583_s27 = sphi %s1645_s27, %s24_s27   ;;  %s1579_s26 = sphi %s1643_s26, %s1880_s26   ;;  %s1575_s25 = sphi %s1641_s25, %s1879_s25   ;;  %s1571_s0 = sphi %s1639_s0, %s1883_s0   ;;  %s1567_s24 = sphi %s1637_s24, %s1882_s24   ;;  %s1563_s23 = sphi %s1635_s23, %s1881_s23  }
  0x14   : > { %s1204_s29 = sadd.s32 4294967294, %s1583_s27   ;;  %s43_s30 = sadd.s32 1, %s1579_s26 }
  0x15   : > { %s242_s6 = sadd.s32 1, %s1571_s0  ;;  %p45_p5 = scmp.ge.s32.totalorder %s43_s30, 2 }
  0x16   : > { %p252_p6 = scmp.ne.s32.totalorder %s1571_s0, %s1567_s24  ;;  %p253_p7 = scmp.eq.s32.totalorder %s1203_s28, 1 }
  0x17   : > { %p258_p8 = scmp.ne.s32.totalorder %s1567_s24, %s1563_s23  ;;  %s1885_s30 = smov (%p45_p5, %s43_s30), 0 }
  0x18   : > { %1872 = sst [smem:[#allocation12_spill]] %s1885_s30  ;;  %p1675_p9 = por %p253_p7, %p252_p6 }
  0x19   : > { %p259_p10 = scmp.eq.s32.totalorder %s1204_s29, 1  ;;  %s237_s8 = ssub.s32 %s1579_s26, %s1885_s30 }
  0x1a   : > { %p1255_p11 = scmp.ge.s32.totalorder %s1583_s27, 1  ;;  %p240_p12 = scmp.eq.s32.totalorder %s237_s8, 0 }
  0x1b   : > { %p1682_p13 = por %p259_p10, %p258_p8  ;;  %p402_p0 = scmp.lt.s32.totalorder %s1583_s27, 3 }
  0x1c   : > { %s1688_s10 = scalar_select %p240_p12, %s1571_s0, %s242_s6  }
  0x1d   : > { %p403_p1 = pnand %p1255_p11, %p402_p0 }
  0x1e   : > { %1875 = sst [smem:[#allocation13_spill]] %s1688_s10  ;;  %s1867_s11 = sand.u32 (!%p403_p1), 1, %s1567_s24   ;;  %vm614_vm0 = vcmask (!%p403_p1), 7168   ;;  %v1590_v0 = vmov (!%p403_p1), -1e+30   ;;  %v1591_v1 = vmov (!%p403_p1), 0.0  }
  0x1f   : > { %406 = sbr.rel (%p403_p1) target bundleno = 1072 (0x430), region = 36  ;;  %p496_p2 = scmp.lt.s32.totalorder (!%p403_p1), %s1575_s25, 1  ;;  %615 = vst.msk [vmem:[#allocation2] sm:$0xff] (!%p403_p1), %vm614_vm0, %v1590_v0  ;;  %616 = vst.msk [vmem:[#allocation2 + $0x8] sm:$0xff] (!%p403_p1), %vm614_vm0, %v1590_v0  ;;  %vm631_vm1 = vcmask (!%p403_p1), 64512  }
  0x20   : > { %s1694_s12 = sshll.u32 (!%p403_p1), %s1867_s11, 3  ;;  %617 = vst.msk [vmem:[#allocation2 + $0x10] sm:$0xff] (!%p403_p1), %vm614_vm0, %v1590_v0  ;;  %618 = vst.msk [vmem:[#allocation2 + $0x18] sm:$0xff] (!%p403_p1), %vm614_vm0, %v1590_v0  ;;  %s1868_s13 = sshll.u32 (!%p403_p1), %s1575_s25, 7 }
  0x21   : > { %619 = vst.msk [vmem:[#allocation2 + $0x20] sm:$0xff] (!%p403_p1), %vm614_vm0, %v1590_v0  ;;  %620 = vst.msk [vmem:[#allocation2 + $0x28] sm:$0xff] (!%p403_p1), %vm614_vm0, %v1590_v0  ;;  %s647_s14 = sld [smem:[#allocation6 + %s1868_s13]] (!%p403_p1)  ;;  %s1747_s18 = scalar_lea.vmem (!%p403_p1), [#allocation7], %s1694_s12 }
  0x22   : > { %621 = vst.msk [vmem:[#allocation2 + $0x30] sm:$0xff] (!%p403_p1), %vm614_vm0, %v1590_v0  ;;  %622 = vst.msk [vmem:[#allocation2 + $0x38] sm:$0xff] (!%p403_p1), %vm614_vm0, %v1590_v0 }
  0x23   : > { %623 = vst.msk [vmem:[#allocation3] sm:$0xff] (!%p403_p1), %vm614_vm0, %v1591_v1  ;;  %624 = vst.msk [vmem:[#allocation3 + $0x8] sm:$0xff] (!%p403_p1), %vm614_vm0, %v1591_v1 }
  0x24   : > { %625 = vst.msk [vmem:[#allocation3 + $0x10] sm:$0xff] (!%p403_p1), %vm614_vm0, %v1591_v1  ;;  %626 = vst.msk [vmem:[#allocation3 + $0x18] sm:$0xff] (!%p403_p1), %vm614_vm0, %v1591_v1 }
  0x25   : > { %627 = vst.msk [vmem:[#allocation3 + $0x20] sm:$0xff] (!%p403_p1), %vm614_vm0, %v1591_v1  ;;  %628 = vst.msk [vmem:[#allocation3 + $0x28] sm:$0xff] (!%p403_p1), %vm614_vm0, %v1591_v1 }
  0x26   : > { %629 = vst.msk [vmem:[#allocation3 + $0x30] sm:$0xff] %vm614_vm0, %v1591_v1  ;;  %630 = vst.msk [vmem:[#allocation3 + $0x38] sm:$0xff] %vm614_vm0, %v1591_v1  ;;  %s497_s15 = scalar_select %p496_p2, %s1575_s25, 1 }
  0x27   : > { %632 = vst.msk [vmem:[#allocation4] sm:$0xff] %vm631_vm1, %v1591_v1  ;;  %633 = vst.msk [vmem:[#allocation4 + $0x8] sm:$0xff] %vm631_vm1, %v1591_v1  ;;  %p1291_p3 = scmp.le.s32.totalorder %s647_s14, 0 }
  0x28   : > { %634 = vst.msk [vmem:[#allocation4 + $0x10] sm:$0xff] %vm631_vm1, %v1591_v1  ;;  %635 = vst.msk [vmem:[#allocation4 + $0x18] sm:$0xff] %vm631_vm1, %v1591_v1  ;;  %s1315_s16 = sshll.u32 %s497_s15, 5  ;;  %s1316_s17 = sshll.u32 %s497_s15, 4 }
  0x29   : > { %636 = vst.msk [vmem:[#allocation4 + $0x20] sm:$0xff] %vm631_vm1, %v1591_v1  ;;  %637 = vst.msk [vmem:[#allocation4 + $0x28] sm:$0xff] %vm631_vm1, %v1591_v1  ;;  %s1729_s20 = scalar_lea.vmem %s1862_s1, %s1315_s16  ;;  %s1734_s28 = scalar_lea.vmem %s1863_s2, %s1316_s17 }
  0x2a   : > { %638 = vst.msk [vmem:[#allocation4 + $0x30] sm:$0xff] %vm631_vm1, %v1591_v1  ;;  %639 = vst.msk [vmem:[#allocation4 + $0x38] sm:$0xff] %vm631_vm1, %v1591_v1  ;;  %s1317_s29 = sshll.u32 %s497_s15, 8  ;;  %s1288_s6 = sshll.u32 %s497_s15, 2 }
  0x2b   : > { %s1739_s13 = scalar_lea.vmem %s1864_s3, %s1317_s29  ;;  %s1744_s10 = scalar_lea.vmem %s1865_s4, %s1288_s6 }
  0x2c   : > { %651 = sbr.rel (%p1291_p3) target bundleno = 782 (0x30e), region = 44  ;;  %s1749_s16 = smov (!%p1291_p3), 0  }
  0x33 LB: >> { %v1592_v2 = vmov 0.0   ;;  %vm1593_vm2 = vmmov 0   ;;  %s1294_s26 = sshll.u32 %s1587_s16, 2  ;;  %s1319_s30 = sshll.u32 %s1587_s16, 6  ;;  %vm702_vm3 = vcmask 1043456   ;;  %v1594_v13 = vmov 0   ;;  %s1587_s16 = sphi %s1749_s16, %s657_s16  }
  0x34   : >> { %1334 = vmatprep.subr.bf16.mxu0 %v1592_v2  ;;  %1336 = vmatprep.mubr.msk.bf16.mxu0 %vm1593_vm2, %v1592_v2  ;;  %s664_s11 = scalar_lea.vmem %s1734_s28, %s1294_s26  ;;  %s1762_s12 = scalar_lea.vmem %s1739_s13, %s1319_s30 }
  0x35   : >> { %1340 = vmatprep.subr.bf16.mxu1 %v1592_v2  ;;  %1356 = vmatprep.mubr.msk.bf16.mxu1 %vm1593_vm2, %v1592_v2  ;;  %v665_v3 = vld [vmem:[%s664_s11] sm:$0xf]  ;;  %s1318_s14 = sshll.u32 %s1587_s16, 3  ;;  %s685_s17 = scalar_lea.vmem %s1744_s10, %s1587_s16  ;;  %v1439_v15 = vld [vmem:[%s1762_s12 + $0x8] sm:$0xff]   ;;  %v1440_v16 = vld [vmem:[%s1762_s12 + $0x10] sm:$0xff]  }
  0x36   : >> { %v704_v4 = vsel %vm702_vm3, %v665_v3, 0  ;;  %s660_s15 = scalar_lea.vmem %s1729_s20, %s1318_s14  ;;  %v1297_v6 = vld [vmem:[%s685_s17] ss:$0 sm:$0xff]  ;;  %1435 = vset.pattern.permute.xlu1 %v1594_v13  ;;  %1436 = vset.pattern.permute.xlu0 %v1594_v13  ;;  %s1776_s19 = sshll.u32 %s1587_s16, 4  ;;  %v1441_v22 = vld [vmem:[%s1762_s12 + $0x18] sm:$0xff]   ;;  %v1443_v27 = vld [vmem:[%s1762_s12 + $0x28] sm:$0xff]  }
  0x37   : >> { %1335 = vmatpush3.bf16.msra.mxu0 %v704_v4  ;;  %v1437_v5 = vld [vmem:[%s660_s15] sm:$0xff]   ;;  %s747_s21 = scalar_lea.vmem [#allocation2], %s1776_s19  ;;  %v1444_v28 = vld [vmem:[%s1762_s12 + $0x30] sm:$0xff]   ;;  %v1445_v29 = vld [vmem:[%s1762_s12 + $0x38] sm:$0xff]   ;;  %s778_s22 = scalar_lea.vmem [#allocation3], %s1776_s19 }
  0x38   : >> { %v1438_v14 = vld [vmem:[%s1762_s12] sm:$0xff]   ;;  %v749_v20 = vld [vmem:[%s747_s21 + $0x8] sm:$0xff]  ;;  %s792_s29 = scalar_lea.vmem [#allocation4], %s1776_s19  ;;  %s657_s16 = sadd.s32 1, %s1587_s16  }
  0x39   : >> { %1341 = vmatpush3.bf16.msra.mxu1 %v1438_v14  ;;  %v748_v17 = vld [vmem:[%s747_s21] sm:$0xff]  ;;  %v780_v46 = vld [vmem:[%s778_s22 + $0x8] sm:$0xff]  ;;  %p654_p4 = scmp.ge.s32.totalorder %s657_s16, 4  }
  0x3a   : >> { %1337 = vmatmul.mubr.msk.bf16.vlgmr.msra.gmra.mrb[0].mxu0 %vm631_vm1, %v1437_v5  ;;  %1342 = vmatprep.subr.bf16.mxu1 %v1592_v2  ;;  %v1442_v26 = vld [vmem:[%s1762_s12 + $0x20] sm:$0xff]   ;;  %v794_v53 = vld [vmem:[%s792_s29 + $0x8] sm:$0xff] }
  0x3b   : >> { %v779_v43 = vld [vmem:[%s778_s22] sm:$0xff] }
  0x3c   : >> { %v793_v51 = vld [vmem:[%s792_s29] sm:$0xff] }
  0x3d   : >> { %1343 = vmatpush3.bf16.msra.mxu1 %v1439_v15 }
  0x3e   : >> { %1344 = vmatprep.subr.bf16.mxu1 %v1592_v2 }
  0x41   : >> { %1345 = vmatpush3.bf16.msra.mxu1 %v1440_v16 }
  0x42   : >> { %1346 = vmatprep.subr.bf16.mxu1 %v1592_v2 }
  0x45   : >> { %1347 = vmatpush3.bf16.msra.mxu1 %v1441_v22 }
  0x46   : >> { %1348 = vmatprep.subr.bf16.mxu1 %v1592_v2 }
  0x49   : >> { %1349 = vmatpush3.bf16.msra.mxu1 %v1442_v26 }
  0x4a   : >> { %1350 = vmatprep.subr.bf16.mxu1 %v1592_v2 }
  0x4d   : >> { %1351 = vmatpush3.bf16.msra.mxu1 %v1443_v27 }
  0x4e   : >> { %1352 = vmatprep.subr.bf16.mxu1 %v1592_v2 }
  0x51   : >> { %1353 = vmatpush3.bf16.msra.mxu1 %v1444_v28 }
  0x52   : >> { %1354 = vmatprep.subr.bf16.mxu1 %v1592_v2 }
  0x55   : >> { %1355 = vmatpush3.bf16.msra.mxu1 %v1445_v29 }
 0x10d   : >> { %v740_v7 = vpop.f32.mrb[0].mxu0 }
 0x10e   : >> { %v741_v8 = vadd.f32 %v1297_v6, %v740_v7  ;;  %v1338_v9 = vpop.f32.mrb[1].mxu0 }
 0x10f   : >> { %v743_v10 = vpop.f32.mrb[2].mxu0 }
 0x110   : >> { %750 = vmax.xlane.f32.xlu0 %v741_v8  ;;  %v1339_v11 = vpop.f32.mrb[3].mxu0  ;;  %v744_v12 = vadd.f32 %v1297_v6, %v743_v10 }
 0x114   : >> { %752 = vmax.xlane.f32.xlu0 %v744_v12 }
 0x19d   : >> { %v751_v18 = vpop.xlane.xlu0 %750 }
 0x19e   : >> { %v754_v19 = vmax.f32 %v748_v17, %v751_v18 }
 0x1a0   : >> { %v756_v21 = vsub.f32 %v748_v17, %v754_v19  ;;  %901 = vst.msk [vmem:[%s747_s21] sm:$0xff] %vm614_vm0, %v754_v19  ;;  %764 = vperm.xlu1 %1435, %v754_v19  }
 0x1a1   : >> { %v753_v23 = vpop.xlane.xlu0 %752 }
 0x1a2   : >> { %v755_v24 = vmax.f32 %v749_v20, %v753_v23  ;;  %v758_v40 = vmul.f32 1.442695, %v756_v21 }
 0x1a4   : >> { %v757_v25 = vsub.f32 %v749_v20, %v755_v24  ;;  %902 = vst.msk [vmem:[%s747_s21 + $0x8] sm:$0xff] %vm614_vm0, %v755_v24  ;;  %769 = vperm.xlu1 %1435, %v755_v24  }
 0x1a6   : >> { %v760_v39 = vmul.f32 1.442695, %v757_v25 }
 0x21f   : >> { %v765_v30 = vpop.permute.xlu1 %764 }
 0x220   : >> { %v772_v31 = vsub.f32 %v741_v8, %v765_v30 }
 0x222   : >> { %v774_v32 = vmul.f32 1.442695, %v772_v31 }
 0x223   : >> { %v770_v33 = vpop.permute.xlu1 %769 }
 0x224   : >> { %1446 = vpow2.f32 %v774_v32  ;;  %v773_v34 = vsub.f32 %v744_v12, %v770_v33 }
 0x226   : >> { %v776_v35 = vmul.f32 1.442695, %v773_v34 }
 0x228   : >> { %1448 = vpow2.f32 %v776_v35 }
 0x229   : >> { %1450 = vpow2.f32 %v760_v39 }
 0x22a   : >> { %1452 = vpow2.f32 %v758_v40 }
 0x22e   : >> { %v1447_v36 = vpop.eup %1446 }
 0x22f   : >> { %783 = vadd.xlane.f32.xlu0 %v1447_v36 }
 0x232   : >> { %v1449_v37 = vpop.eup %1448 }
 0x233   : >> { %785 = vadd.xlane.f32.xlu1 %v1449_v37  ;;  %v807_v38 = vpack.c.bf16 %v1449_v37, %v1447_v36  ;;  %v1451_v41 = vpop.eup %1450 }
 0x234   : >> { %v1453_v42 = vpop.eup %1452  ;;  %v782_v48 = vmul.f32 %v1451_v41, %v780_v46 }
 0x235   : >> { %1357 = vmatmul.mubr.bf16.vlgmr.msra.gmra.mrb[0].mxu1 %v807_v38  ;;  %v781_v44 = vmul.f32 %v1453_v42, %v779_v43 }
 0x244   : >> { %802 = vperm.xlu1 %1435, %v1451_v41  }
 0x245   : >> { %797 = vperm.xlu0 %1436, %v1453_v42  }
 0x2bc   : >> { %v784_v45 = vpop.xlane.xlu0 %783 }
 0x2bd   : >> { %v787_v47 = vadd.f32 %v784_v45, %v781_v44 }
 0x2bf   : >> { %790 = vst.msk [vmem:[%s778_s22] sm:$0xff] %vm614_vm0, %v787_v47 }
 0x2c0   : >> { %v786_v49 = vpop.xlane.xlu1 %785 }
 0x2c1   : >> { %v788_v50 = vadd.f32 %v786_v49, %v782_v48 }
 0x2c3   : >> { %791 = vst.msk [vmem:[%s778_s22 + $0x8] sm:$0xff] %vm614_vm0, %v788_v50 }
 0x2c4   : >> { %v798_v52 = vpop.permute.xlu0 %797  ;;  %v803_v54 = vpop.permute.xlu1 %802 }
 0x2c5   : >> { %v805_v55 = vmul.f32 %v798_v52, %v793_v51  ;;  %v806_v57 = vmul.f32 %v803_v54, %v794_v53 }
 0x307   : > { %656 = sbr.rel (!%p654_p4) target bundleno = 51 (0x33), region = 112 }
 0x308   : >> { %v890_v56 = vpop.f32.mrb[0].mxu1 }
 0x309   : >> { %v897_v58 = vadd.f32 %v890_v56, %v805_v55  ;;  %v1358_v59 = vpop.f32.mrb[1].mxu1 }
 0x30a   : >> { %v893_v60 = vpop.f32.mrb[2].mxu1 }
 0x30b   : >> { %899 = vst.msk [vmem:[%s792_s29] sm:$0xff] %vm631_vm1, %v897_v58  ;;  %v898_v61 = vadd.f32 %v893_v60, %v806_v57  ;;  %v1359_v62 = vpop.f32.mrb[3].mxu1 }
 0x30d   : >> { %900 = vst.msk [vmem:[%s792_s29 + $0x8] sm:$0xff] %vm631_vm1, %v898_v61 }
 0x30e PF: > { %v949_v63 = vld [vmem:[#allocation3 + $0x20] sm:$0xff]  ;;  %v927_v0 = vld [vmem:[#allocation3 + $0x10] sm:$0xff]  ;;  %v950_v1 = vld [vmem:[#allocation3 + $0x28] sm:$0xff]  ;;  %v1595_v2 = vmov 0   ;;  %s1596_s10 = smov 16   ;;  %s1597_s13 = smov 8  }
 0x30f   : > { %1455 = vset.pattern.permute.xlu1 %v1595_v2  ;;  %1454 = vset.pattern.permute.xlu0 %v1595_v2  ;;  %v951_v3 = vmax.f32 %v949_v63, 1e-30  ;;  %v929_v4 = vmax.f32 %v927_v0, 1e-30  ;;  %v952_v5 = vmax.f32 %v950_v1, 1e-30 }
 0x310   : > { %v928_v6 = vld [vmem:[#allocation3 + $0x18] sm:$0xff]  ;;  %v971_v9 = vld [vmem:[#allocation3 + $0x30] sm:$0xff]  ;;  %v907_v12 = vld [vmem:[#allocation3 + $0x8] sm:$0xff]  ;;  %s1598_s20 = smov 24   ;;  %vm1019_vm4 = vcmask 130048   ;;  %vm1022_vm5 = vcmask 195584  }
 0x311   : > { %v972_v7 = vld [vmem:[#allocation3 + $0x38] sm:$0xff]  ;;  %1471 = vrcp.f32 %v951_v3  ;;  %v930_v8 = vmax.f32 %v928_v6, 1e-30  ;;  %v973_v11 = vmax.f32 %v971_v9, 1e-30  ;;  %v906_v13 = vld [vmem:[#allocation3] sm:$0xff] }
 0x312   : > { %1473 = vrcp.f32 %v929_v4  ;;  %v974_v10 = vmax.f32 %v972_v7, 1e-30  ;;  %v909_v14 = vmax.f32 %v907_v12, 1e-30  ;;  %v908_v15 = vmax.f32 %v906_v13, 1e-30 }
 0x313   : > { %1475 = vrcp.f32 %v952_v5  ;;  %s1052_s28 = sshll.u32 %s1747_s18, 4  ;;  %vm1033_vm6 = vcmask 257024   ;;  %s1876_s6 = sshll.u32 %s1575_s25, 7  ;;  %s1809_s28 = int_to_ptr.vmem [resolvable:$true] %s1052_s28 }
 0x314   : > { %1477 = vrcp.f32 %v930_v8  ;;  %v956_v26 = vld [vmem:[#allocation4 + $0x20] sm:$0xff]  ;;  %v957_v27 = vld [vmem:[#allocation4 + $0x28] sm:$0xff]  ;;  %v934_v28 = vld [vmem:[#allocation4 + $0x10] sm:$0xff]  ;;  %s1807_s26 = scalar_lea.hbm %s1866_s5, %s1876_s6  ;;  %s1877_s30 = sand.u32 1, %s1567_s24  }
 0x315   : > { %1479 = vrcp.f32 %v974_v10  ;;  %v935_v29 = vld [vmem:[#allocation4 + $0x18] sm:$0xff]  ;;  %v978_v38 = vld [vmem:[#allocation4 + $0x30] sm:$0xff]  ;;  %v913_v47 = vld [vmem:[#allocation4 + $0x8] sm:$0xff]  ;;  %s1815_s11 = scalar_lea.sflag [#allocation8], %s1877_s30  ;;  %s1499_s12 = scalar_lea.vmem %s1809_s28, 128 }
 0x316   : > { %1481 = vrcp.f32 %v973_v11  ;;  %v979_v36 = vld [vmem:[#allocation4 + $0x38] sm:$0xff]  ;;  %v912_v48 = vld [vmem:[#allocation4] sm:$0xff]  ;;  %p1500_p5 = scmp.ne.s32.totalorder %s1809_s28, %s1499_s12  ;;  %s1599_s25 = smov [#allocation7]  }
 0x317   : > { %1483 = vrcp.f32 %v909_v14  ;;  %s1503_s14 = sshll.u32 %s1599_s25, 4  ;;  %s1504_s14 = int_to_ptr.vmem [resolvable:$false] %s1503_s14 }
 0x318   : > { %1485 = vrcp.f32 %v908_v15  ;;  %p1501_p6 = pnand %p1500_p5, %p1675_p9  ;;  %s1505_s15 = scalar_lea.vmem %s1504_s14, 256 }
 0x319   : > { %p1506_p8 = scmp.lt.s32.totalorder %s1809_s28, %s1504_s14  ;;  %p1507_p10 = scmp.lt.s32.totalorder %s1505_s15, %s1499_s12 }
 0x31a   : > { %p1502_p7 = pneg %p1501_p6 }
 0x31b   : > { %v1472_v16 = vpop.eup %1471  ;;  %p1508_p11 = por %p1507_p10, %p1506_p8 }
 0x31c   : > { %v1474_v17 = vpop.eup %1473  ;;  %960 = vperm.xlu1 %1455, %v1472_v16  }
 0x31d   : > { %v1476_v18 = vpop.eup %1475  ;;  %938 = vperm.xlu0 %1454, %v1474_v17   ;;  %p1509_p12 = pnand %p1508_p11, %p1502_p7 }
 0x31e   : > { %v1478_v19 = vpop.eup %1477 }
 0x31f   : > { %v1480_v20 = vpop.eup %1479 }
 0x320   : > { %965 = vperm.xlu1 %1455, %v1476_v18   ;;  %v1482_v21 = vpop.eup %1481 }
 0x321   : > { %943 = vperm.xlu0 %1454, %v1478_v19   ;;  %v1484_v22 = vpop.eup %1483 }
 0x322   : > { %v1486_v23 = vpop.eup %1485 }
 0x324   : > { %987 = vperm.xlu1 %1455, %v1480_v20  }
 0x325   : > { %982 = vperm.xlu0 %1454, %v1482_v21  }
 0x328   : > { %921 = vperm.xlu1 %1455, %v1484_v22  }
 0x329   : > { %916 = vperm.xlu0 %1454, %v1486_v23  }
 0x39b   : > { %v961_v24 = vpop.permute.xlu1 %960 }
 0x39c   : > { %v939_v25 = vpop.permute.xlu0 %938  ;;  %v968_v31 = vmul.f32 %v961_v24, %v956_v26 }
 0x39d   : > { %v946_v34 = vmul.f32 %v939_v25, %v934_v28 }
 0x39f   : > { %v966_v30 = vpop.permute.xlu1 %965 }
 0x3a0   : > { %v969_v32 = vmul.f32 %v966_v30, %v957_v27  ;;  %v944_v33 = vpop.permute.xlu0 %943 }
 0x3a1   : > { %v947_v35 = vmul.f32 %v944_v33, %v935_v29 }
 0x3a2   : > { %v1461_v37 = vpack.i.bf16 %v969_v32, %v968_v31 }
 0x3a3   : > { %v1456_v39 = vpack.i.bf16 %v947_v35, %v946_v34  ;;  %v988_v40 = vpop.permute.xlu1 %987 }
 0x3a4   : > { %v991_v41 = vmul.f32 %v988_v40, %v979_v36  ;;  %v983_v42 = vpop.permute.xlu0 %982  ;;  %1462 = vrot.lane.b32.xlu1 %v1461_v37, %s1596_s10 }
 0x3a5   : > { %v990_v43 = vmul.f32 %v983_v42, %v978_v38  ;;  %1457 = vrot.lane.b32.xlu0 %v1456_v39, %s1597_s13 }
 0x3a7   : > { %v1466_v44 = vpack.i.bf16 %v991_v41, %v990_v43  ;;  %v922_v45 = vpop.permute.xlu1 %921 }
 0x3a8   : > { %v917_v46 = vpop.permute.xlu0 %916  ;;  %v925_v51 = vmul.f32 %v922_v45, %v913_v47 }
 0x3a9   : > { %1467 = vrot.lane.b32.xlu0 %v1466_v44, %s1598_s20  ;;  %v924_v52 = vmul.f32 %v917_v46, %v912_v48 }
 0x416   : > { %v1463_v49 = vpop.permute.xlu1 %1462 }
 0x417   : > { %v1458_v50 = vpop.permute.xlu0 %1457  ;;  %v1465_v55 = vunpack.i.h.bf16 %v1463_v49  ;;  %v1464_v56 = vunpack.i.l.bf16 %v1463_v49 }
 0x418   : > { %v1460_v53 = vunpack.i.h.bf16 %v1458_v50  ;;  %v1459_v54 = vunpack.i.l.bf16 %v1458_v50 }
 0x41a   : > { %v1018_v57 = vsel %vm631_vm1, %v925_v51, %v1460_v53  ;;  %v1017_v58 = vsel %vm631_vm1, %v924_v52, %v1459_v54 }
 0x41b   : > { %v1468_v59 = vpop.permute.xlu0 %1467  ;;  %v1021_v62 = vsel %vm1019_vm4, %v1018_v57, %v1465_v55  ;;  %v1020_v63 = vsel %vm1019_vm4, %v1017_v58, %v1464_v56 }
 0x41c   : > { %v1470_v60 = vunpack.i.h.bf16 %v1468_v59  ;;  %v1469_v61 = vunpack.i.l.bf16 %v1468_v59 }
 0x41e   : > { %v1023_v0 = vsel %vm1022_vm5, %v1020_v63, %v1469_v61  ;;  %v1024_v1 = vsel %vm1022_vm5, %v1021_v62, %v1470_v60 }
 0x41f   : > { %v1320_v2 = vpack.c.bf16 %v1023_v0, %v1023_v0  ;;  %v1321_v3 = vpack.c.bf16 %v1024_v1, %v1024_v1 }
 0x421   : > { %1034 = vst.msk [vmem:[%s1747_s18] sm:$0xf] %vm1033_vm6, %v1320_v2  ;;  %1035 = vst.msk [vmem:[%s1747_s18 + $0x4] sm:$0xf] %vm1033_vm6, %v1321_v3 }
 0x422   : > { %1512 = shalt.err (!%p1509_p12)
}
 0x423   : > { %s1513_s18 = scalar_lea.hbm %s1807_s26, 128  ;;  %s1517_s21 = scalar_lea.hbm %s1866_s5, 256 }
 0x424   : > { %p1514_p0 = scmp.ne.s32.totalorder %s1807_s26, %s1513_s18  ;;  %p1518_p3 = scmp.lt.u32.totalorder %s1807_s26, %s1866_s5 }
 0x425   : > { %p1519_p4 = scmp.lt.u32.totalorder %s1517_s21, %s1513_s18  ;;  %p1521_p6 = scmp.lt.u32.totalorder %s1513_s18, %s1807_s26 }
 0x426   : > { %p1515_p1 = pnand %p1514_p0, %p1675_p9 }
 0x427   : > { %p1520_p5 = por %p1519_p4, %p1518_p3 }
 0x428   : > { %p1516_p2 = pneg %p1515_p1 }
 0x429   : > { %p1522_p7 = por %p1521_p6, %p1520_p5 }
 0x42b   : > { %p1523_p8 = pnand %p1522_p7, %p1516_p2 }
 0x42d   : > { %1526 = shalt.err (!%p1523_p8)
}
 0x42e   : > { %s1600_s10 = smov 64   ;;  %s1601_s13 = smov 4  }
 0x42f   : > { %1360 = dma.vmem_to_hbm [thread:$0]  (%p1675_p9), %s1809_s28, 128, %s1807_s26, %s1815_s11, %s1600_s10, %s1600_s10, %s1601_s13  }
 0x430 PF: > { %p1366_p10 = scmp.ge.s32.totalorder %s1583_s27, 2  ;;  %s1067_s20 = sand.u32 1, %s1563_s23  }
 0x431   : > { %s1068_s6 = scalar_lea.sflag [#allocation8], %s1067_s20 }
 0x432   : > { %p1363_p11 = pnand %p1366_p10, %p1682_p13 }
 0x434   : > { %1558 = dma.done.wait (!%p1363_p11), %s1068_s6, 128  }
 0x435   : > { %1560 = vsyncadd (!%p1363_p11), %s1068_s6, 4294967168  ;;  %s24_s27 = sadd.s32 1, %s1583_s27   ;;  %s1878_s8 = sld [smem:[#allocation13_spill]] }
 0x436   : > { %p21_p12 = scmp.ge.s32.totalorder %s24_s27, 4   ;;  %s1879_s25 = sld [smem:[#allocation11_spill]] }
 0x437   : > { %s1880_s26 = sld [smem:[#allocation12_spill]]  ;;  %s1881_s23 = smov %s1567_s24 }
 0x438   : > { %s1882_s24 = smov %s1571_s0  ;;  %23 = sbr.rel (!%p21_p12) target bundleno = 19 (0x13), region = 123 }
 0x43b   : > { %s1883_s0 = smov %s1878_s8 }
 0x43f   :  { %1073 = vsyncpa [#allocation8], 1 }
 0x440   :  { %1075 = vsyncpa [#allocation8 + $0x1], 1 }

</bundles_post_ra>
